<compile_context>
chip_gen: v7x
topology: tpu7x:2x2x1
jax: 0.10.0
libtpu: 0.0.40
codegen_flags: <defaults>
</compile_context>

<pallas_src>
import math

import jax
import jax.numpy as jnp
from jax import lax
from jax.experimental import pallas as pl
from jax.experimental.pallas import tpu as pltpu


def _round_up(n: int, m: int) -> int:
    return ((n + m - 1) // m) * m


def critic_kernel(x_ref,
                  w1_ref, b1_ref,
                  w2_ref, b2_ref,
                  w3_ref, b3_ref,
                  w4_ref, b4_ref,
                  o_ref):
    # x block: (TB, IN).  All compute keeps the batch on the lane axis.
    x = x_ref[...]
    # fc1 + ReLU:  h1 = W1 @ x^T  -> (H1, TB)
    h = lax.dot_general(w1_ref[...], x, (((1,), (1,)), ((), ())),
                        preferred_element_type=jnp.float32)
    h = jnp.maximum(h + b1_ref[...], 0.0)
    # fc2 + ReLU -> (H2, TB)
    h = jnp.dot(w2_ref[...], h, preferred_element_type=jnp.float32)
    h = jnp.maximum(h + b2_ref[...], 0.0)
    # fc3 + LeakyReLU(0.2) -> (H3, TB)
    h = jnp.dot(w3_ref[...], h, preferred_element_type=jnp.float32)
    h = h + b3_ref[...]
    h = jnp.where(h > 0.0, h, 0.2 * h)
    # fc4 (out_features = 1): VPU multiply + sublane reduce, not an N=1 matmul.
    out = jnp.sum(h * w4_ref[...], axis=0, keepdims=True) + b4_ref[...]
    o_ref[...] = out.astype(o_ref.dtype)


def critic_net_pallas(x, params, *, block_batch=None):
    """x: [B, input_size] float32.  params: PyTorch-layout weights/biases."""
    B, in_features = x.shape

    # Batch tile: multiple of 128 (lane width) so the output store is lane
    # dense; 512 rows for large batches (~85% of HBM roofline in the reference
    # measurements), capped at the padded batch for small inputs.
    if block_batch is None:
        tb = min(512, _round_up(max(B, 1), 128))
    else:
        tb = block_batch
    b_pad = _round_up(B, tb)
    if b_pad != B:
        x = jnp.pad(x, ((0, b_pad - B), (0, 0)))
    grid = (b_pad // tb,)

    # Weights in PyTorch layout [out, in]; biases as [out, 1] columns so they
    # broadcast over the lane (batch) axis.  w4 passed as a [H3, 1] column for
    # the VPU reduction.
    w1 = params["w1"]
    w2 = params["w2"]
    w3 = params["w3"]
    w4 = params["w4"].reshape(-1, 1)
    b1 = params["b1"].reshape(-1, 1)
    b2 = params["b2"].reshape(-1, 1)
    b3 = params["b3"].reshape(-1, 1)
    b4 = params["b4"].reshape(1, 1)

    def resident(a):
        # Constant index_map -> block stays resident in VMEM, DMA'd once.
        return pl.BlockSpec(a.shape, lambda i: (0, 0))

    out = pl.pallas_call(
        critic_kernel,
        grid=grid,
        in_specs=[
            pl.BlockSpec((tb, in_features), lambda i: (i, 0)),
            resident(w1), resident(b1),
            resident(w2), resident(b2),
            resident(w3), resident(b3),
            resident(w4), resident(b4),
        ],
        out_specs=pl.BlockSpec((1, tb), lambda i: (0, i)),
        out_shape=jax.ShapeDtypeStruct((1, b_pad), jnp.float32),
        compiler_params=pltpu.CompilerParams(
            dimension_semantics=("parallel",)),
    )(x, w1, b1, w2, b2, w3, b3, w4, b4)

    return out[0, :B].reshape(B, 1)


def init_params(key, input_size, hidden_size=128):
    """PyTorch nn.Linear-style init: U(-1/sqrt(fan_in), 1/sqrt(fan_in)).
    Weights stored as [out, in] (PyTorch layout), biases as [out]."""
    dims = [
        (hidden_size, input_size),
        (hidden_size // 2, hidden_size),
        (hidden_size // 4, hidden_size // 2),
        (1, hidden_size // 4),
    ]
    params = {}
    for i, (fan_out, fan_in) in enumerate(dims, start=1):
        key, kw, kb = jax.random.split(key, 3)
        bound = 1.0 / math.sqrt(fan_in)
        params[f"w{i}"] = jax.random.uniform(
            kw, (fan_out, fan_in), jnp.float32, -bound, bound)
        params[f"b{i}"] = jax.random.uniform(
            kb, (fan_out,), jnp.float32, -bound, bound)
    return params


def critic_net_ref(x, params):
    """Pure-JAX reference (matches the PyTorch forward)."""
    hp = jax.lax.Precision.HIGHEST
    h = jnp.dot(x, params["w1"].T, precision=hp) + params["b1"]
    h = jnp.maximum(h, 0.0)
    h = jnp.dot(h, params["w2"].T, precision=hp) + params["b2"]
    h = jnp.maximum(h, 0.0)
    h = jnp.dot(h, params["w3"].T, precision=hp) + params["b3"]
    h = jnp.where(h > 0.0, h, 0.2 * h)
    return jnp.dot(h, params["w4"].T, precision=hp) + params["b4"]


if __name__ == "__main__":
    key = jax.random.PRNGKey(0)
    kx, kp = jax.random.split(key)

    batch = 8
    input_size = 32
    hidden_size = 128

    x = jax.random.normal(kx, (batch, input_size), jnp.float32)
    params = init_params(kp, input_size, hidden_size)

    out = critic_net_pallas(x, params)
    out = jax.block_until_ready(out)

    ref = critic_net_ref(x, params)
    assert out.shape == (batch, 1), out.shape
    assert jnp.allclose(out, ref, atol=1e-3, rtol=1e-3), (
        "mismatch vs reference")

    print("KERNEL_OK")
</pallas_src>

<mosaic_0001>
module attributes {stable_mosaic.version = 11 : i64} {
  func.func @critic_kernel(%arg0: i32, %arg1: memref<128x32xf32, #tpu.memory_space<vmem>>, %arg2: memref<128x32xf32, #tpu.memory_space<vmem>>, %arg3: memref<128x1xf32, #tpu.memory_space<vmem>>, %arg4: memref<64x128xf32, #tpu.memory_space<vmem>>, %arg5: memref<64x1xf32, #tpu.memory_space<vmem>>, %arg6: memref<32x64xf32, #tpu.memory_space<vmem>>, %arg7: memref<32x1xf32, #tpu.memory_space<vmem>>, %arg8: memref<32x1xf32, #tpu.memory_space<vmem>>, %arg9: memref<1x1xf32, #tpu.memory_space<vmem>>, %arg10: memref<1x128xf32, #tpu.memory_space<vmem>>) attributes {dimension_semantics = [#tpu.dimension_semantics<parallel>], iteration_bounds = array<i64: 1>, scalar_prefetch = 0 : i64, scratch_operands = 0 : i64, tpu.core_type = #tpu.core_type<tc>, window_params = [{transform_indices = @transform_0, window_bounds = array<i64: 128, 32>}, {pipeline_mode = #tpu.pipeline_mode<synchronous>, transform_indices = @transform_1, window_bounds = array<i64: 128, 32>}, {pipeline_mode = #tpu.pipeline_mode<synchronous>, transform_indices = @transform_2, window_bounds = array<i64: 128, 1>}, {pipeline_mode = #tpu.pipeline_mode<synchronous>, transform_indices = @transform_3, window_bounds = array<i64: 64, 128>}, {pipeline_mode = #tpu.pipeline_mode<synchronous>, transform_indices = @transform_4, window_bounds = array<i64: 64, 1>}, {pipeline_mode = #tpu.pipeline_mode<synchronous>, transform_indices = @transform_5, window_bounds = array<i64: 32, 64>}, {pipeline_mode = #tpu.pipeline_mode<synchronous>, transform_indices = @transform_6, window_bounds = array<i64: 32, 1>}, {pipeline_mode = #tpu.pipeline_mode<synchronous>, transform_indices = @transform_7, window_bounds = array<i64: 32, 1>}, {pipeline_mode = #tpu.pipeline_mode<synchronous>, transform_indices = @transform_8, window_bounds = array<i64: 1, 1>}, {transform_indices = @transform_9, window_bounds = array<i64: 1, 128>}]} {
    %c0 = arith.constant 0 : index
    %c0_0 = arith.constant 0 : index
    %0 = vector.load %arg1[%c0, %c0_0] : memref<128x32xf32, #tpu.memory_space<vmem>>, vector<128x32xf32>
    %c0_1 = arith.constant 0 : index
    %c0_2 = arith.constant 0 : index
    %1 = vector.load %arg2[%c0_1, %c0_2] : memref<128x32xf32, #tpu.memory_space<vmem>>, vector<128x32xf32>
    %cst = arith.constant dense<0.000000e+00> : vector<128x128xf32>
    %2 = tpu.matmul %1, %0, %cst {dimension_numbers = #tpu.dot_dimension_numbers<[1], [1], [0], [0], [0, 0, 1, 0], [], []>} : vector<128x32xf32>, vector<128x32xf32>, vector<128x128xf32> -> vector<128x128xf32>
    %c0_3 = arith.constant 0 : index
    %c0_4 = arith.constant 0 : index
    %3 = vector.load %arg3[%c0_3, %c0_4] : memref<128x1xf32, #tpu.memory_space<vmem>>, vector<128x1xf32>
    %4 = vector.broadcast %3 : vector<128x1xf32> to vector<128x128xf32>
    %5 = arith.addf %2, %4 : vector<128x128xf32>
    %cst_5 = arith.constant 0.000000e+00 : f32
    %6 = vector.broadcast %cst_5 : f32 to vector<128x128xf32>
    %7 = arith.maximumf %5, %6 : vector<128x128xf32>
    %c0_6 = arith.constant 0 : index
    %c0_7 = arith.constant 0 : index
    %8 = vector.load %arg4[%c0_6, %c0_7] : memref<64x128xf32, #tpu.memory_space<vmem>>, vector<64x128xf32>
    %cst_8 = arith.constant dense<0.000000e+00> : vector<64x128xf32>
    %9 = tpu.matmul %8, %7, %cst_8 {dimension_numbers = #tpu.dot_dimension_numbers<[1], [0], [0], [1], [0, 0, 1, 1], [], []>} : vector<64x128xf32>, vector<128x128xf32>, vector<64x128xf32> -> vector<64x128xf32>
    %c0_9 = arith.constant 0 : index
    %c0_10 = arith.constant 0 : index
    %10 = vector.load %arg5[%c0_9, %c0_10] : memref<64x1xf32, #tpu.memory_space<vmem>>, vector<64x1xf32>
    %11 = vector.broadcast %10 : vector<64x1xf32> to vector<64x128xf32>
    %12 = arith.addf %9, %11 : vector<64x128xf32>
    %cst_11 = arith.constant 0.000000e+00 : f32
    %13 = vector.broadcast %cst_11 : f32 to vector<64x128xf32>
    %14 = arith.maximumf %12, %13 : vector<64x128xf32>
    %c0_12 = arith.constant 0 : index
    %c0_13 = arith.constant 0 : index
    %15 = vector.load %arg6[%c0_12, %c0_13] : memref<32x64xf32, #tpu.memory_space<vmem>>, vector<32x64xf32>
    %cst_14 = arith.constant dense<0.000000e+00> : vector<32x128xf32>
    %16 = tpu.matmul %15, %14, %cst_14 {dimension_numbers = #tpu.dot_dimension_numbers<[1], [0], [0], [1], [0, 0, 1, 1], [], []>} : vector<32x64xf32>, vector<64x128xf32>, vector<32x128xf32> -> vector<32x128xf32>
    %c0_15 = arith.constant 0 : index
    %c0_16 = arith.constant 0 : index
    %17 = vector.load %arg7[%c0_15, %c0_16] : memref<32x1xf32, #tpu.memory_space<vmem>>, vector<32x1xf32>
    %18 = vector.broadcast %17 : vector<32x1xf32> to vector<32x128xf32>
    %19 = arith.addf %16, %18 : vector<32x128xf32>
    %cst_17 = arith.constant 0.000000e+00 : f32
    %20 = vector.broadcast %cst_17 : f32 to vector<32x128xf32>
    %21 = arith.cmpf ogt, %19, %20 : vector<32x128xf32>
    %cst_18 = arith.constant 2.000000e-01 : f32
    %22 = vector.broadcast %cst_18 : f32 to vector<32x128xf32>
    %23 = arith.mulf %22, %19 : vector<32x128xf32>
    %24 = arith.select %21, %19, %23 : vector<32x128xi1>, vector<32x128xf32>
    %c0_19 = arith.constant 0 : index
    %c0_20 = arith.constant 0 : index
    %25 = vector.load %arg8[%c0_19, %c0_20] : memref<32x1xf32, #tpu.memory_space<vmem>>, vector<32x1xf32>
    %26 = vector.broadcast %25 : vector<32x1xf32> to vector<32x128xf32>
    %27 = arith.mulf %24, %26 : vector<32x128xf32>
    %cst_21 = arith.constant dense<0.000000e+00> : vector<128xf32>
    %28 = vector.multi_reduction <add>, %27, %cst_21 [0] : vector<32x128xf32> to vector<128xf32>
    %29 = vector.shape_cast %28 : vector<128xf32> to vector<1x128xf32>
    %c0_22 = arith.constant 0 : index
    %c0_23 = arith.constant 0 : index
    %30 = vector.load %arg9[%c0_22, %c0_23] : memref<1x1xf32, #tpu.memory_space<vmem>>, vector<1x1xf32>
    %31 = vector.broadcast %30 : vector<1x1xf32> to vector<1x128xf32>
    %32 = arith.addf %29, %31 : vector<1x128xf32>
    %c0_24 = arith.constant 0 : index
    %c0_25 = arith.constant 0 : index
    %33 = vector.load %arg10[%c0_24, %c0_25] : memref<1x128xf32, #tpu.memory_space<vmem>>, vector<1x128xf32>
    tpu.vector_store %arg10[%c0_24, %c0_25], %32 {strides = array<i32>} : memref<1x128xf32, #tpu.memory_space<vmem>>, vector<1x128xf32>,
    return
  }
  func.func @transform_0(%arg0: i32) -> (i32, i32) {
    %c0_i32 = arith.constant 0 : i32
    %c0_i32_0 = arith.constant 0 : i32
    return %arg0, %c0_i32 : i32, i32
  }
  func.func @transform_1(%arg0: i32) -> (i32, i32) {
    %c0_i32 = arith.constant 0 : i32
    %c0_i32_0 = arith.constant 0 : i32
    %c0_i32_1 = arith.constant 0 : i32
    return %c0_i32, %c0_i32_0 : i32, i32
  }
  func.func @transform_2(%arg0: i32) -> (i32, i32) {
    %c0_i32 = arith.constant 0 : i32
    %c0_i32_0 = arith.constant 0 : i32
    %c0_i32_1 = arith.constant 0 : i32
    return %c0_i32, %c0_i32_0 : i32, i32
  }
  func.func @transform_3(%arg0: i32) -> (i32, i32) {
    %c0_i32 = arith.constant 0 : i32
    %c0_i32_0 = arith.constant 0 : i32
    %c0_i32_1 = arith.constant 0 : i32
    return %c0_i32, %c0_i32_0 : i32, i32
  }
  func.func @transform_4(%arg0: i32) -> (i32, i32) {
    %c0_i32 = arith.constant 0 : i32
    %c0_i32_0 = arith.constant 0 : i32
    %c0_i32_1 = arith.constant 0 : i32
    return %c0_i32, %c0_i32_0 : i32, i32
  }
  func.func @transform_5(%arg0: i32) -> (i32, i32) {
    %c0_i32 = arith.constant 0 : i32
    %c0_i32_0 = arith.constant 0 : i32
    %c0_i32_1 = arith.constant 0 : i32
    return %c0_i32, %c0_i32_0 : i32, i32
  }
  func.func @transform_6(%arg0: i32) -> (i32, i32) {
    %c0_i32 = arith.constant 0 : i32
    %c0_i32_0 = arith.constant 0 : i32
    %c0_i32_1 = arith.constant 0 : i32
    return %c0_i32, %c0_i32_0 : i32, i32
  }
  func.func @transform_7(%arg0: i32) -> (i32, i32) {
    %c0_i32 = arith.constant 0 : i32
    %c0_i32_0 = arith.constant 0 : i32
    %c0_i32_1 = arith.constant 0 : i32
    return %c0_i32, %c0_i32_0 : i32, i32
  }
  func.func @transform_8(%arg0: i32) -> (i32, i32) {
    %c0_i32 = arith.constant 0 : i32
    %c0_i32_0 = arith.constant 0 : i32
    %c0_i32_1 = arith.constant 0 : i32
    return %c0_i32, %c0_i32_0 : i32, i32
  }
  func.func @transform_9(%arg0: i32) -> (i32, i32) {
    %c0_i32 = arith.constant 0 : i32
    %c0_i32_0 = arith.constant 0 : i32
    return %c0_i32, %arg0 : i32, i32
  }
}

</mosaic_0001>

<bundles_post_ra>
// kernel: tpu_custom_call.1
= control target key start
LH: loop header
LB: loop body
LE: loop exit
PB: predicated region body
PF: predicated region fallthrough
CT: control target
= control target key end

     0   :  { %s1494_s0 = inlined_call_operand.vmem [shape: f32[128,32], index: 0, kind: input, shape index: {}]   ;;  %s1495_s1 = inlined_call_operand.vmem [shape: f32[128,32], index: 1, kind: input, shape index: {}]   ;;  %s1496_s2 = inlined_call_operand.vmem [shape: f32[128,1], index: 2, kind: input, shape index: {}]   ;;  %s1497_s3 = inlined_call_operand.vmem [shape: f32[64,128], index: 3, kind: input, shape index: {}]   ;;  %s1498_s4 = inlined_call_operand.vmem [shape: f32[64,1], index: 4, kind: input, shape index: {}]   ;;  %s1499_s5 = inlined_call_operand.vmem [shape: f32[32,64], index: 5, kind: input, shape index: {}]   ;;  %s1500_s6 = inlined_call_operand.vmem [shape: f32[32,1], index: 6, kind: input, shape index: {}]   ;;  %s1501_s7 = inlined_call_operand.vmem [shape: f32[32,1], index: 7, kind: input, shape index: {}]   ;;  %s1502_s8 = inlined_call_operand.<no memory space> [shape: f32[1,1], index: 8, kind: input, shape index: {}]   ;;  %s1503_s9 = inlined_call_operand.hbm [shape: f32[1,128], index: 9, kind: output, shape index: {}]  }
   0x1   :  { %v14_v0 = vstv %s1502_s8 }
   0x2   :  { %15 = vst [vmem:[#allocation2] sm:$0x1] %v14_v0 }
   0x3   :  { %v35_v1 = vld [vmem:[%s1494_s0] sm:$0xff]  ;;  %v36_v2 = vld [vmem:[%s1494_s0 + $0x8] sm:$0xff]  ;;  %vm163_vm0 = vcmask 261120   ;;  %v37_v3 = vld [vmem:[%s1494_s0 + $0x10] sm:$0xff]  ;;  %v1141_v7 = vmov 0  }
   0x4   :  { %v1017_v4 = vpack.c.bf16 %v36_v2, %v35_v1  ;;  %vm1207_vm1 = vmpackc.low %vm163_vm0, %vm163_vm0  ;;  %v38_v6 = vld [vmem:[%s1494_s0 + $0x18] sm:$0xff]  ;;  %1115 = vset.pattern.permute.xlu0 %v1141_v7  ;;  %1116 = vset.pattern.permute.xlu1 %v1141_v7  ;;  %v51_v9 = vld [vmem:[%s1495_s1] sm:$0xff] }
   0x5   :  { %v1023_v8 = vpack.c.bf16 %v38_v6, %v37_v3  ;;  %v39_v10 = vld [vmem:[%s1494_s0 + $0x20] sm:$0xff]  ;;  %v40_v11 = vld [vmem:[%s1494_s0 + $0x28] sm:$0xff]  ;;  %927 = vmatprep.mubr.msk.f32.mxu0 %vm163_vm0, %v51_v9  ;;  %v69_v15 = vld [vmem:[%s1496_s2 + $0x10] sm:$0xff] }
   0x6   :  { %1019 = vmatprep.subr.msk.bf16.mxu0 %vm1207_vm1, %v1017_v4  ;;  %v1029_v12 = vpack.c.bf16 %v40_v11, %v39_v10  ;;  %v67_v13 = vld [vmem:[%s1496_s2] sm:$0xff]  ;;  %v68_v14 = vld [vmem:[%s1496_s2 + $0x8] sm:$0xff]  ;;  %95 = vperm.xlu1 %1116, %v69_v15   ;;  %v70_v16 = vld [vmem:[%s1496_s2 + $0x18] sm:$0xff] }
   0x7   :  { %1022 = vmatpush3.bf16.xpose.msk.msra.mxu0 %vm1207_vm1, %v1017_v4  ;;  %85 = vperm.xlu0 %1115, %v67_v13   ;;  %v41_v17 = vld [vmem:[%s1494_s0 + $0x30] sm:$0xff]  ;;  %v42_v18 = vld [vmem:[%s1494_s0 + $0x38] sm:$0xff]  ;;  %v71_v19 = vld [vmem:[%s1496_s2 + $0x20] sm:$0xff] }
   0x8   :  { %1025 = vmatprep.subr.msk.bf16.mxu0 %vm1207_vm1, %v1023_v8  ;;  %v1035_v20 = vpack.c.bf16 %v42_v18, %v41_v17  ;;  %v72_v21 = vld [vmem:[%s1496_s2 + $0x28] sm:$0xff]  ;;  %v73_v22 = vld [vmem:[%s1496_s2 + $0x30] sm:$0xff]  ;;  %v74_v23 = vld [vmem:[%s1496_s2 + $0x38] sm:$0xff] }
   0x9   :  { %v43_v24 = vld [vmem:[%s1494_s0 + $0x40] sm:$0xff]  ;;  %v44_v25 = vld [vmem:[%s1494_s0 + $0x48] sm:$0xff] }
   0xa   :  { %100 = vperm.xlu1 %1116, %v70_v16  }
   0xb   :  { %90 = vperm.xlu0 %1115, %v68_v14  }
   0xe   :  { %110 = vperm.xlu1 %1116, %v72_v21  }
   0xf   :  { %1028 = vmatpush3.bf16.xpose.msk.msra.mxu0 %vm1207_vm1, %v1023_v8  ;;  %105 = vperm.xlu0 %1115, %v71_v19  }
  0x10   :  { %1031 = vmatprep.subr.msk.bf16.mxu0 %vm1207_vm1, %v1029_v12 }
  0x13   :  { %115 = vperm.xlu0 %1115, %v73_v22  }
  0x17   :  { %1034 = vmatpush3.bf16.xpose.msk.msra.mxu0 %vm1207_vm1, %v1029_v12 }
  0x18   :  { %1037 = vmatprep.subr.msk.bf16.mxu0 %vm1207_vm1, %v1035_v20 }
  0x19   :  { %16 = vsyncpa [#allocation4], 0  ;;  %v75_v26 = vld [vmem:[%s1496_s2 + $0x40] sm:$0xff]  ;;  %120 = vperm.xlu1 %1116, %v74_v23   ;;  %v1041_v27 = vpack.c.bf16 %v44_v25, %v43_v24  ;;  %v76_v28 = vld [vmem:[%s1496_s2 + $0x48] sm:$0xff]  ;;  %vm618_vm2 = vcmask 523264  }
  0x1a   :  { %125 = vperm.xlu0 %1115, %v75_v26   ;;  %v77_v29 = vld [vmem:[%s1496_s2 + $0x50] sm:$0xff]  ;;  %v78_v30 = vld [vmem:[%s1496_s2 + $0x58] sm:$0xff]  ;;  %v79_v33 = vld [vmem:[%s1496_s2 + $0x60] sm:$0xff] }
  0x1b   :  { %v45_v31 = vld [vmem:[%s1494_s0 + $0x50] sm:$0xff]  ;;  %v46_v32 = vld [vmem:[%s1494_s0 + $0x58] sm:$0xff]  ;;  %v80_v35 = vld [vmem:[%s1496_s2 + $0x68] sm:$0xff] }
  0x1c   :  { %v1047_v34 = vpack.c.bf16 %v46_v32, %v45_v31  ;;  %v81_v36 = vld [vmem:[%s1496_s2 + $0x70] sm:$0xff]  ;;  %v82_v37 = vld [vmem:[%s1496_s2 + $0x78] sm:$0xff]  ;;  %v47_v38 = vld [vmem:[%s1494_s0 + $0x60] sm:$0xff] }
  0x1d   :  { %130 = vperm.xlu1 %1116, %v76_v28   ;;  %v48_v39 = vld [vmem:[%s1494_s0 + $0x68] sm:$0xff]  ;;  %v429_v40 = vld [vmem:[%s1498_s4] sm:$0xff]  ;;  %v431_v43 = vld [vmem:[%s1498_s4 + $0x10] sm:$0xff] }
  0x1e   :  { %135 = vperm.xlu0 %1115, %v77_v29   ;;  %v1053_v41 = vpack.c.bf16 %v48_v39, %v47_v38  ;;  %v430_v42 = vld [vmem:[%s1498_s4 + $0x8] sm:$0xff]  ;;  %v432_v44 = vld [vmem:[%s1498_s4 + $0x18] sm:$0xff]  ;;  %v49_v45 = vld [vmem:[%s1494_s0 + $0x70] sm:$0xff] }
  0x1f   :  { %1040 = vmatpush3.bf16.xpose.msk.msra.mxu0 %vm1207_vm1, %v1035_v20  ;;  %v50_v46 = vld [vmem:[%s1494_s0 + $0x78] sm:$0xff]  ;;  %v433_v47 = vld [vmem:[%s1498_s4 + $0x20] sm:$0xff]  ;;  %v434_v49 = vld [vmem:[%s1498_s4 + $0x28] sm:$0xff] }
  0x20   :  { %1043 = vmatprep.subr.msk.bf16.mxu0 %vm1207_vm1, %v1041_v27  ;;  %v1059_v48 = vpack.c.bf16 %v50_v46, %v49_v45  ;;  %v435_v50 = vld [vmem:[%s1498_s4 + $0x30] sm:$0xff]  ;;  %v436_v51 = vld [vmem:[%s1498_s4 + $0x38] sm:$0xff]  ;;  %v594_v52 = vld [vmem:[%s1500_s6] sm:$0xff] }
  0x21   :  { %140 = vperm.xlu1 %1116, %v78_v30   ;;  %v595_v53 = vld [vmem:[%s1500_s6 + $0x8] sm:$0xff]  ;;  %v596_v54 = vld [vmem:[%s1500_s6 + $0x10] sm:$0xff]  ;;  %v597_v55 = vld [vmem:[%s1500_s6 + $0x18] sm:$0xff] }
  0x22   :  { %145 = vperm.xlu0 %1115, %v79_v33   ;;  %v728_v56 = vld [vmem:[%s1501_s7] sm:$0xff]  ;;  %v52_v57 = vld [vmem:[%s1495_s1 + $0x8] sm:$0xff]  ;;  %v53_v58 = vld [vmem:[%s1495_s1 + $0x10] sm:$0xff] }
  0x23   :  { %v729_v59 = vld [vmem:[%s1501_s7 + $0x8] sm:$0xff]  ;;  %v730_v60 = vld [vmem:[%s1501_s7 + $0x10] sm:$0xff]  ;;  %v54_v61 = vld [vmem:[%s1495_s1 + $0x18] sm:$0xff] }
  0x24   :  { %v55_v62 = vld [vmem:[%s1495_s1 + $0x20] sm:$0xff]  ;;  %v731_v63 = vld [vmem:[%s1501_s7 + $0x18] sm:$0xff]  ;;  %v56_v1 = vld [vmem:[%s1495_s1 + $0x28] sm:$0xff] }
  0x25   :  { %150 = vperm.xlu1 %1116, %v80_v35   ;;  %v765_v0 = vld [vmem:[#allocation2] sm:$0x1]  ;;  %v57_v2 = vld [vmem:[%s1495_s1 + $0x30] sm:$0xff]  ;;  %v58_v3 = vld [vmem:[%s1495_s1 + $0x38] sm:$0xff] }
  0x26   :  { %155 = vperm.xlu0 %1115, %v81_v36   ;;  %v59_v4 = vld [vmem:[%s1495_s1 + $0x40] sm:$0xff]  ;;  %v60_v5 = vld [vmem:[%s1495_s1 + $0x48] sm:$0xff]  ;;  %v61_v6 = vld [vmem:[%s1495_s1 + $0x50] sm:$0xff] }
  0x27   :  { %1046 = vmatpush3.bf16.xpose.msk.msra.mxu0 %vm1207_vm1, %v1041_v27  ;;  %v62_v7 = vld [vmem:[%s1495_s1 + $0x58] sm:$0xff]  ;;  %v63_v8 = vld [vmem:[%s1495_s1 + $0x60] sm:$0xff]  ;;  %v64_v9 = vld [vmem:[%s1495_s1 + $0x68] sm:$0xff] }
  0x28   :  { %1049 = vmatprep.subr.msk.bf16.mxu0 %vm1207_vm1, %v1047_v34  ;;  %v65_v10 = vld [vmem:[%s1495_s1 + $0x70] sm:$0xff]  ;;  %v66_v11 = vld [vmem:[%s1495_s1 + $0x78] sm:$0xff]  ;;  %v421_v12 = vld [vmem:[%s1497_s3] sm:$0xff] }
  0x29   :  { %160 = vperm.xlu1 %1116, %v82_v37   ;;  %983 = vmatprep.mubr.f32.mxu1 %v421_v12 }
  0x2a   :  { %439 = vperm.xlu0 %1115, %v429_v40  }
  0x2d   :  { %444 = vperm.xlu1 %1116, %v430_v42  }
  0x2e   :  { %449 = vperm.xlu0 %1115, %v431_v43  }
  0x2f   :  { %1052 = vmatpush3.bf16.xpose.msk.msra.mxu0 %vm1207_vm1, %v1047_v34 }
  0x30   :  { %1055 = vmatprep.subr.msk.bf16.mxu0 %vm1207_vm1, %v1053_v41 }
  0x31   :  { %454 = vperm.xlu1 %1116, %v432_v44  }
  0x32   :  { %459 = vperm.xlu0 %1115, %v433_v47  }
  0x35   :  { %464 = vperm.xlu1 %1116, %v434_v49  }
  0x36   :  { %469 = vperm.xlu0 %1115, %v435_v50  }
  0x37   :  { %1058 = vmatpush3.bf16.xpose.msk.msra.mxu0 %vm1207_vm1, %v1053_v41 }
  0x38   :  { %1061 = vmatprep.subr.msk.bf16.mxu0 %vm1207_vm1, %v1059_v48 }
  0x39   :  { %474 = vperm.xlu1 %1116, %v436_v51  }
  0x3a   :  { %600 = vperm.xlu0 %1115, %v594_v52  }
  0x3d   :  { %605 = vperm.xlu1 %1116, %v595_v53  }
  0x3e   :  { %610 = vperm.xlu0 %1115, %v596_v54  }
  0x3f   :  { %1064 = vmatpush3.bf16.xpose.msk.msra.mxu0 %vm1207_vm1, %v1059_v48 }
  0x41   :  { %615 = vperm.xlu1 %1116, %v597_v55  }
  0x42   :  { %734 = vperm.xlu0 %1115, %v728_v56  }
  0x45   :  { %739 = vperm.xlu1 %1116, %v729_v59  }
  0x46   :  { %928 = vmatmul.mubr.msk.f32.vlgmr.msra.gmra.mrb[0].mxu0 %vm163_vm0, %v52_v57  ;;  %744 = vperm.xlu0 %1115, %v730_v60  }
  0x47   :  { %930 = vmatprep.mubr.msk.f32.mxu0 %vm163_vm0, %v53_v58 }
  0x49   :  { %749 = vperm.xlu1 %1116, %v731_v63  }
  0x4a   :  { %931 = vmatmul.mubr.msk.f32.gmra.mrb[2].mxu0 %vm163_vm0, %v54_v61  ;;  %768 = vperm.xlu0 %1115, %v765_v0  }
  0x4b   :  { %933 = vmatprep.mubr.msk.f32.mxu0 %vm163_vm0, %v55_v62 }
  0x4e   :  { %934 = vmatmul.mubr.msk.f32.gmra.mrb[4].mxu0 %vm163_vm0, %v56_v1 }
  0x4f   :  { %936 = vmatprep.mubr.msk.f32.mxu0 %vm163_vm0, %v57_v2 }
  0x52   :  { %937 = vmatmul.mubr.msk.f32.gmra.mrb[6].mxu0 %vm163_vm0, %v58_v3 }
  0x53   :  { %939 = vmatprep.mubr.msk.f32.mxu0 %vm163_vm0, %v59_v4 }
  0x56   :  { %940 = vmatmul.mubr.msk.f32.gmra.mrb[8].mxu0 %vm163_vm0, %v60_v5 }
  0x57   :  { %942 = vmatprep.mubr.msk.f32.mxu0 %vm163_vm0, %v61_v6 }
  0x5a   :  { %943 = vmatmul.mubr.msk.f32.gmra.mrb[10].mxu0 %vm163_vm0, %v62_v7 }
  0x5b   :  { %945 = vmatprep.mubr.msk.f32.mxu0 %vm163_vm0, %v63_v8 }
  0x5e   :  { %946 = vmatmul.mubr.msk.f32.gmra.mrb[12].mxu0 %vm163_vm0, %v64_v9 }
  0x5f   :  { %948 = vmatprep.mubr.msk.f32.mxu0 %vm163_vm0, %v65_v10 }
  0x62   :  { %949 = vmatmul.mubr.msk.f32.gmra.mrb[14].mxu0 %vm163_vm0, %v66_v11 }
  0x85   :  { %v96_v13 = vpop.permute.xlu1 %95 }
  0x86   :  { %v86_v14 = vpop.permute.xlu0 %85 }
  0x89   :  { %v101_v15 = vpop.permute.xlu1 %100 }
  0x8a   :  { %v91_v16 = vpop.permute.xlu0 %90 }
  0x8d   :  { %v111_v17 = vpop.permute.xlu1 %110 }
  0x8e   :  { %v106_v18 = vpop.permute.xlu0 %105 }
  0x92   :  { %v116_v27 = vpop.permute.xlu0 %115 }
  0x98   :  { %v121_v24 = vpop.permute.xlu1 %120 }
  0x99   :  { %v126_v40 = vpop.permute.xlu0 %125 }
  0x9c   :  { %v131_v37 = vpop.permute.xlu1 %130 }
  0x9d   :  { %v136_v52 = vpop.permute.xlu0 %135 }
  0xa0   :  { %v141_v49 = vpop.permute.xlu1 %140 }
  0xa1   :  { %v146_v1 = vpop.permute.xlu0 %145 }
  0xa4   :  { %v151_v62 = vpop.permute.xlu1 %150 }
  0xa8   :  { %v161_v10 = vpop.permute.xlu1 %160 }
 0x119   :  { %v929_v19 = vpop.f32.mrb[0].mxu0 }
 0x11a   :  { %v332_v20 = vadd.f32 %v929_v19, %v91_v16  ;;  %v326_v21 = vpop.f32.mrb[1].mxu0 }
 0x11b   :  { %v327_v22 = vadd.f32 %v326_v21, %v86_v14  ;;  %v422_v21 = vld [vmem:[%s1497_s3 + $0x8] sm:$0xff] }
 0x11c   :  { %v406_v23 = vmax.f32 %v332_v20, 0.0 }
 0x11d   :  { %v405_v25 = vmax.f32 %v327_v22, 0.0  ;;  %v932_v26 = vpop.f32.mrb[2].mxu0  ;;  %v423_v22 = vld [vmem:[%s1497_s3 + $0x10] sm:$0xff] }
 0x11e   :  { %v342_v28 = vadd.f32 %v932_v26, %v101_v15  ;;  %v336_v29 = vpop.f32.mrb[3].mxu0  ;;  %v427_v26 = vld [vmem:[%s1497_s3 + $0x30] sm:$0xff] }
 0x11f   :  { %v337_v30 = vadd.f32 %v336_v29, %v96_v13  ;;  %v1065_v31 = vpack.c.bf16 %v406_v23, %v405_v25  ;;  %v156_v13 = vpop.permute.xlu0 %155  ;;  %v424_v23 = vld [vmem:[%s1497_s3 + $0x18] sm:$0xff]  ;;  %v426_v25 = vld [vmem:[%s1497_s3 + $0x28] sm:$0xff]  ;;  %v445_v29 = vpop.permute.xlu1 %444 }
 0x120   :  { %v408_v32 = vmax.f32 %v342_v28, 0.0  ;;  %v590_v28 = vld [vmem:[%s1499_s5] sm:$0xff] }
 0x121   :  { %v407_v33 = vmax.f32 %v337_v30, 0.0  ;;  %v935_v34 = vpop.f32.mrb[4].mxu0  ;;  %1066 = vmatprep.subr.bf16.mxu1 %v1065_v31 }
 0x122   :  { %v352_v35 = vadd.f32 %v935_v34, %v111_v17  ;;  %v346_v36 = vpop.f32.mrb[5].mxu0  ;;  %1068 = vmatpush3.bf16.msra.mxu1 %v1065_v31 }
 0x123   :  { %v1069_v38 = vpack.c.bf16 %v408_v32, %v407_v33  ;;  %v347_v39 = vadd.f32 %v346_v36, %v106_v18  ;;  %v440_v30 = vpop.permute.xlu0 %439  ;;  %v455_v31 = vpop.permute.xlu1 %454 }
 0x124   :  { %v410_v41 = vmax.f32 %v352_v35, 0.0 }
 0x125   :  { %v409_v42 = vmax.f32 %v347_v39, 0.0  ;;  %v938_v43 = vpop.f32.mrb[6].mxu0  ;;  %1070 = vmatprep.subr.bf16.mxu1 %v1069_v38 }
 0x126   :  { %v362_v44 = vadd.f32 %v938_v43, %v121_v24  ;;  %v356_v45 = vpop.f32.mrb[7].mxu0  ;;  %1072 = vmatpush3.bf16.msra.mxu1 %v1069_v38  ;;  %v425_v24 = vld [vmem:[%s1497_s3 + $0x20] sm:$0xff] }
 0x127   :  { %v1073_v46 = vpack.c.bf16 %v410_v41, %v409_v42  ;;  %v357_v47 = vadd.f32 %v356_v45, %v116_v27  ;;  %v428_v27 = vld [vmem:[%s1497_s3 + $0x38] sm:$0xff]  ;;  %v450_v33 = vpop.permute.xlu0 %449  ;;  %v465_v42 = vpop.permute.xlu1 %464 }
 0x128   :  { %v412_v48 = vmax.f32 %v362_v44, 0.0 }
 0x129   :  { %v411_v50 = vmax.f32 %v357_v47, 0.0  ;;  %v941_v51 = vpop.f32.mrb[8].mxu0  ;;  %1074 = vmatprep.subr.bf16.mxu1 %v1073_v46 }
 0x12a   :  { %v372_v53 = vadd.f32 %v941_v51, %v131_v37  ;;  %v366_v54 = vpop.f32.mrb[9].mxu0  ;;  %1076 = vmatpush3.bf16.msra.mxu1 %v1073_v46 }
 0x12b   :  { %v1077_v55 = vpack.c.bf16 %v412_v48, %v411_v50  ;;  %v367_v56 = vadd.f32 %v366_v54, %v126_v40  ;;  %v460_v45 = vpop.permute.xlu0 %459  ;;  %v475_v54 = vpop.permute.xlu1 %474 }
 0x12c   :  { %v414_v57 = vmax.f32 %v372_v53, 0.0 }
 0x12d   :  { %v413_v58 = vmax.f32 %v367_v56, 0.0  ;;  %v944_v59 = vpop.f32.mrb[10].mxu0  ;;  %1078 = vmatprep.subr.bf16.mxu1 %v1077_v55 }
 0x12e   :  { %v382_v60 = vadd.f32 %v944_v59, %v141_v49  ;;  %v376_v61 = vpop.f32.mrb[11].mxu0  ;;  %1080 = vmatpush3.bf16.msra.mxu1 %v1077_v55 }
 0x12f   :  { %v1081_v63 = vpack.c.bf16 %v414_v57, %v413_v58  ;;  %v377_v0 = vadd.f32 %v376_v61, %v136_v52  ;;  %v470_v57 = vpop.permute.xlu0 %469 }
 0x130   :  { %v416_v2 = vmax.f32 %v382_v60, 0.0 }
 0x131   :  { %v415_v3 = vmax.f32 %v377_v0, 0.0  ;;  %v947_v4 = vpop.f32.mrb[12].mxu0  ;;  %1082 = vmatprep.subr.bf16.mxu1 %v1081_v63 }
 0x132   :  { %v392_v5 = vadd.f32 %v947_v4, %v151_v62  ;;  %v386_v6 = vpop.f32.mrb[13].mxu0  ;;  %1084 = vmatpush3.bf16.msra.mxu1 %v1081_v63 }
 0x133   :  { %v1085_v7 = vpack.c.bf16 %v416_v2, %v415_v3  ;;  %v387_v8 = vadd.f32 %v386_v6, %v146_v1  ;;  %v591_v1 = vld [vmem:[%s1499_s5 + $0x8] sm:$0xff]  ;;  %v592_v2 = vld [vmem:[%s1499_s5 + $0x10] sm:$0xff]  ;;  %v593_v3 = vld [vmem:[%s1499_s5 + $0x18] sm:$0xff]  ;;  %v601_v4 = vpop.permute.xlu0 %600  ;;  %s1142_s5 = smov [#allocation3]  }
 0x134   :  { %v418_v9 = vmax.f32 %v392_v5, 0.0  ;;  %v606_v5 = vpop.permute.xlu1 %605  ;;  %s783_s15 = sshll.u32 %s1142_s5, 4  ;;  %s784_s15 = int_to_ptr.vmem [resolvable:$true] %s783_s15 }
 0x135   :  { %v417_v11 = vmax.f32 %v387_v8, 0.0  ;;  %v950_v12 = vpop.f32.mrb[14].mxu0  ;;  %1086 = vmatprep.subr.bf16.mxu1 %v1085_v7  ;;  %s1117_s16 = scalar_lea.vmem %s784_s15, 16  ;;  %s1121_s6 = scalar_lea.vmem %s784_s15, 32 }
 0x136   :  { %v402_v14 = vadd.f32 %v950_v12, %v161_v10  ;;  %v396_v15 = vpop.f32.mrb[15].mxu0  ;;  %1088 = vmatpush3.bf16.msra.mxu1 %v1085_v7  ;;  %p1118_p0 = scmp.ne.s32.totalorder %s784_s15, %s1117_s16  ;;  %p1122_p1 = scmp.lt.s32.totalorder %s784_s15, %s784_s15 }
 0x137   :  { %v1089_v16 = vpack.c.bf16 %v418_v9, %v417_v11  ;;  %v397_v17 = vadd.f32 %v396_v15, %v156_v13  ;;  %v611_v6 = vpop.permute.xlu0 %610  ;;  %p1123_p2 = scmp.lt.s32.totalorder %s1121_s6, %s1117_s16 }
 0x138   :  { %v420_v18 = vmax.f32 %v402_v14, 0.0  ;;  %v616_v7 = vpop.permute.xlu1 %615 }
 0x139   :  { %v419_v19 = vmax.f32 %v397_v17, 0.0  ;;  %1090 = vmatprep.subr.bf16.mxu1 %v1089_v16  ;;  %p1124_p3 = por %p1123_p2, %p1122_p1 }
 0x13a   :  { %1092 = vmatpush3.bf16.msra.mxu1 %v1089_v16 }
 0x13b   :  { %v1093_v20 = vpack.c.bf16 %v420_v18, %v419_v19  ;;  %v735_v13 = vpop.permute.xlu0 %734  ;;  %p1125_p4 = pnand %p1124_p3, %p1118_p0 }
 0x13c   :  { %v740_v16 = vpop.permute.xlu1 %739 }
 0x13d   :  { %1094 = vmatprep.subr.bf16.mxu1 %v1093_v20 }
 0x13e   :  { %1096 = vmatpush3.bf16.msra.mxu1 %v1093_v20 }
 0x141   :  { %984 = vmatmul.mubr.f32.vlgmr.msra.gmra.mrb[0].mxu1 %v422_v21 }
 0x142   :  { %986 = vmatprep.mubr.f32.mxu1 %v423_v22 }
 0x145   :  { %987 = vmatmul.mubr.f32.gmra.mrb[2].mxu1 %v424_v23 }
 0x146   :  { %989 = vmatprep.mubr.f32.mxu1 %v425_v24 }
 0x149   :  { %990 = vmatmul.mubr.f32.gmra.mrb[4].mxu1 %v426_v25 }
 0x14a   :  { %992 = vmatprep.mubr.f32.mxu1 %v427_v26 }
 0x14d   :  { %993 = vmatmul.mubr.f32.gmra.mrb[6].mxu1 %v428_v27  ;;  %v745_v27 = vpop.permute.xlu0 %744 }
 0x14e   :  { %1011 = vmatprep.mubr.msk.f32.mxu1 %vm618_vm2, %v590_v28 }
 0x214   :  { %v985_v32 = vpop.f32.mrb[0].mxu1 }
 0x215   :  { %v549_v34 = vadd.f32 %v985_v32, %v445_v29  ;;  %v543_v35 = vpop.f32.mrb[1].mxu1 }
 0x216   :  { %v544_v36 = vadd.f32 %v543_v35, %v440_v30 }
 0x217   :  { %v583_v37 = vmax.f32 %v549_v34, 0.0  ;;  %v771_v34 = vlaneseq }
 0x218   :  { %v582_v38 = vmax.f32 %v544_v36, 0.0  ;;  %v988_v39 = vpop.f32.mrb[2].mxu1 }
 0x219   :  { %v559_v40 = vadd.f32 %v988_v39, %v455_v31  ;;  %v553_v41 = vpop.f32.mrb[3].mxu1  ;;  %v750_v31 = vpop.permute.xlu1 %749 }
 0x21a   :  { %v1097_v43 = vpack.c.bf16 %v583_v37, %v582_v38  ;;  %v554_v44 = vadd.f32 %v553_v41, %v450_v33  ;;  %v772_v37 = vshrl.u32 %v771_v34, 7 }
 0x21b   :  { %v585_v46 = vmax.f32 %v559_v40, 0.0 }
 0x21c   :  { %v584_v47 = vmax.f32 %v554_v44, 0.0  ;;  %v991_v48 = vpop.f32.mrb[4].mxu1  ;;  %1098 = vmatprep.subr.bf16.mxu1 %v1097_v43  ;;  %v773_v40 = vsub.s32 0, %v772_v37 }
 0x21d   :  { %v569_v49 = vadd.f32 %v991_v48, %v465_v42  ;;  %v563_v50 = vpop.f32.mrb[5].mxu1  ;;  %1100 = vmatpush3.bf16.msra.mxu1 %v1097_v43  ;;  %v769_v42 = vpop.permute.xlu0 %768 }
 0x21e   :  { %v1101_v51 = vpack.c.bf16 %v585_v46, %v584_v47  ;;  %v564_v52 = vadd.f32 %v563_v50, %v460_v45  ;;  %v774_v44 = vrot.slane %v769_v42, %v773_v40 }
 0x21f   :  { %v587_v53 = vmax.f32 %v569_v49, 0.0 }
 0x220   :  { %v586_v55 = vmax.f32 %v564_v52, 0.0  ;;  %v994_v56 = vpop.f32.mrb[6].mxu1  ;;  %1102 = vmatprep.subr.bf16.mxu1 %v1101_v51 }
 0x221   :  { %v579_v58 = vadd.f32 %v994_v56, %v475_v54  ;;  %v573_v59 = vpop.f32.mrb[7].mxu1  ;;  %1104 = vmatpush3.bf16.msra.mxu1 %v1101_v51 }
 0x222   :  { %v1105_v60 = vpack.c.bf16 %v587_v53, %v586_v55  ;;  %v574_v61 = vadd.f32 %v573_v59, %v470_v57 }
 0x223   :  { %v589_v62 = vmax.f32 %v579_v58, 0.0 }
 0x224   :  { %v588_v63 = vmax.f32 %v574_v61, 0.0  ;;  %1106 = vmatprep.subr.bf16.mxu1 %v1105_v60 }
 0x225   :  { %1108 = vmatpush3.bf16.msra.mxu1 %v1105_v60 }
 0x226   :  { %v1109_v0 = vpack.c.bf16 %v589_v62, %v588_v63 }
 0x228   :  { %1110 = vmatprep.subr.bf16.mxu1 %v1109_v0 }
 0x229   :  { %1112 = vmatpush3.bf16.msra.mxu1 %v1109_v0 }
 0x22c   :  { %1012 = vmatmul.mubr.msk.f32.vlgmr.msra.gmra.mrb[8].mxu1 %vm618_vm2, %v591_v1 }
 0x22d   :  { %1014 = vmatprep.mubr.msk.f32.mxu1 %vm618_vm2, %v592_v2 }
 0x230   :  { %1015 = vmatmul.mubr.msk.f32.gmra.mrb[10].mxu1 %vm618_vm2, %v593_v3 }
 0x2ff   :  { %v1013_v8 = vpop.f32.mrb[8].mxu1 }
 0x300   :  { %v703_v9 = vadd.f32 %v1013_v8, %v606_v5  ;;  %v697_v10 = vpop.f32.mrb[9].mxu1 }
 0x301   :  { %v698_v11 = vadd.f32 %v697_v10, %v601_v4 }
 0x302   :  { %vm717_vm3 = vcmp.gt.f32.partialorder %v703_v9, 0.0  ;;  %v721_v12 = vmul.f32 0.2, %v703_v9 }
 0x303   :  { %vm716_vm4 = vcmp.gt.f32.partialorder %v698_v11, 0.0  ;;  %v720_v14 = vmul.f32 0.2, %v698_v11  ;;  %v1016_v15 = vpop.f32.mrb[10].mxu1 }
 0x304   :  { %v725_v17 = vsel %vm717_vm3, %v703_v9, %v721_v12  ;;  %v713_v18 = vadd.f32 %v1016_v15, %v616_v7  ;;  %v707_v19 = vpop.f32.mrb[11].mxu1 }
 0x305   :  { %v753_v20 = vmul.f32 %v740_v16, %v725_v17  ;;  %v724_v21 = vsel %vm716_vm4, %v698_v11, %v720_v14  ;;  %v708_v22 = vadd.f32 %v707_v19, %v611_v6 }
 0x306   :  { %v752_v23 = vmul.f32 %v735_v13, %v724_v21  ;;  %vm719_vm5 = vcmp.gt.f32.partialorder %v713_v18, 0.0  ;;  %v723_v24 = vmul.f32 0.2, %v713_v18 }
 0x307   :  { %vm718_vm6 = vcmp.gt.f32.partialorder %v708_v22, 0.0  ;;  %v722_v25 = vmul.f32 0.2, %v708_v22 }
 0x308   :  { %v756_v26 = vadd.f32 %v753_v20, %v752_v23  ;;  %v727_v28 = vsel %vm719_vm5, %v713_v18, %v723_v24 }
 0x309   :  { %v726_v29 = vsel %vm718_vm6, %v708_v22, %v722_v25  ;;  %v755_v32 = vmul.f32 %v750_v31, %v727_v28 }
 0x30a   :  { %v754_v30 = vmul.f32 %v745_v27, %v726_v29 }
 0x30c   :  { %v757_v33 = vadd.f32 %v756_v26, %v754_v30 }
 0x30e   :  { %v758_v35 = vadd.f32 %v757_v33, %v755_v32 }
 0x310   :  { %v759_v36 = vrot.slane %v758_v35, 4 }
 0x312   :  { %v760_v38 = vadd.f32 %v759_v36, %v758_v35 }
 0x314   :  { %v761_v39 = vrot.slane %v760_v38, 2 }
 0x316   :  { %v762_v41 = vadd.f32 %v761_v39, %v760_v38 }
 0x318   :  { %v763_v43 = vrot.slane %v762_v41, 1 }
 0x31a   :  { %v764_v45 = vadd.f32 %v763_v43, %v762_v41 }
 0x31c   :  { %v775_v46 = vadd.f32 %v774_v44, %v764_v45 }
 0x31e   :  { %776 = vst [vmem:[#allocation3] sm:$0x1] %v775_v46 }
 0x31f   :  { %1128 = shalt.err (!%p1125_p4)
}
 0x320   :  { %s1129_s18 = scalar_lea.hbm %s1503_s9, 16 }
 0x321   :  { %p1130_p5 = scmp.ne.s32.totalorder %s1503_s9, %s1129_s18  ;;  %p1133_p6 = scmp.lt.u32.totalorder %s1129_s18, %s1503_s9 }
 0x323   :  { %p1135_p7 = pnand %p1133_p6, %p1130_p5 }
 0x325   :  { %1138 = shalt.err (!%p1135_p7)
}
 0x326   :  { %786 = dma.vmem_to_hbm [thread:$0]  %s784_s15, 16, %s1503_s9, [#allocation4]  }
 0x327   :  { %1139 = dma.done.wait [#allocation4], 16  }
 0x328   :  { %1140 = vsyncadd [#allocation4], 4294967280 }
 0x329   :  { %790 = vsyncpa [#allocation4], 1 }

</bundles_post_ra>
